<compile_context>
chip_gen: v5e
topology: v5e:2x2
jax: 0.10.0
libtpu: 0.0.40
codegen_flags: <defaults>
</compile_context>

<pallas_src>
import math
import functools

import numpy as np
import jax
import jax.numpy as jnp
from jax import lax
from jax.experimental import pallas as pl
from jax.experimental.pallas import tpu as pltpu  # noqa: F401  (TPU backend assumed)


# ----------------------------------------------------------------------------
# Pallas kernel: whole problem in one invocation (no grid), 2-D token slab.
# ----------------------------------------------------------------------------
def _intra_attn_kernel(x_ref, wqkv_ref, bqkv_ref, wo_ref, bo_ref,
                       gamma_ref, beta_ref, mask_ref, o_ref, *, num_heads, eps):
    NL, E = x_ref.shape          # (N*L, E) batch-major contiguous token slab
    H = num_heads
    hd = E // H

    # Parameter / input loads: whole contiguous slabs, hoisted once.
    x = x_ref[...].astype(jnp.float32)       # (NL, E)
    wqkv = wqkv_ref[...]                     # (E, 3E) -- Q columns pre-scaled
    bqkv = bqkv_ref[...]                     # (1, 3E)
    wo = wo_ref[...]                         # (E, E)
    bo = bo_ref[...]                         # (1, E)
    gamma = gamma_ref[...]                   # (1, E)
    beta = beta_ref[...]                     # (1, E)
    mask = mask_ref[...]                     # (H*NL, H*NL): 0 on diag blocks, -1e30 off

    # Fused QKV projection over ALL tokens at once: one MXU push, 3E-lane result.
    qkv = jnp.dot(x, wqkv, preferred_element_type=jnp.float32) + bqkv    # (NL, 3E)
    q = qkv[:, 0 * E:1 * E]      # already scaled by 1/sqrt(hd) via packing
    k = qkv[:, 1 * E:2 * E]
    v = qkv[:, 2 * E:3 * E]

    # Move heads from lanes to sublanes: (NL, E) -> (H*NL, hd); block order (h, n, l).
    q_all = jnp.concatenate([q[:, h * hd:(h + 1) * hd] for h in range(H)], axis=0)
    k_all = jnp.concatenate([k[:, h * hd:(h + 1) * hd] for h in range(H)], axis=0)
    v_all = jnp.concatenate([v[:, h * hd:(h + 1) * hd] for h in range(H)], axis=0)

    # Block-diagonal attention: two matmuls cover every (batch, head) pair.
    s = lax.dot_general(q_all, k_all, (((1,), (1,)), ((), ())),
                        preferred_element_type=jnp.float32)              # (H*NL, H*NL)
    s = s + mask                                   # -1e30 kills cross-block entries
    s = s - jnp.max(s, axis=-1, keepdims=True)
    p = jnp.exp(s)                                 # off-block -> exactly 0
    p = p * pl.reciprocal(jnp.sum(p, axis=-1, keepdims=True))   # exact (tolerance)
    ctx_all = jnp.dot(p, v_all, preferred_element_type=jnp.float32)      # (H*NL, hd)

    # Heads back to lanes: (H*NL, hd) -> (NL, E).
    ctx = jnp.concatenate([ctx_all[h * NL:(h + 1) * NL, :] for h in range(H)], axis=1)

    # Output projection + residual (dropout is identity at inference).
    attn = jnp.dot(ctx, wo, preferred_element_type=jnp.float32) + bo
    y = x + attn

    # LayerNorm over the embedding dim (biased variance, PyTorch eps).
    mean = jnp.mean(y, axis=-1, keepdims=True)
    yc = y - mean
    var = jnp.mean(yc * yc, axis=-1, keepdims=True)
    o_ref[...] = (yc * lax.rsqrt(var + eps) * gamma + beta).astype(o_ref.dtype)


# ----------------------------------------------------------------------------
# Wrapper: PyTorch (L, N, E) layout at the boundary; contiguous (N*L, E) inside.
# ----------------------------------------------------------------------------
def intra_modality_attention(x_lne, packed_params, *, num_heads, eps=1e-5):
    """x_lne: (L, N, E) float32 — same convention as the PyTorch module."""
    wqkv, bqkv, wo, bo, gamma, beta = packed_params
    L, N, E = x_lne.shape
    NL = N * L
    H = num_heads

    # Batch-major contiguous token slab (tiny wrapper transpose is free).
    x2d = jnp.transpose(x_lne, (1, 0, 2)).reshape(NL, E)

    # Static block-diagonal mask: blocks of size L over (head, batch) pairs.
    blk = np.arange(H * NL) // L
    mask = jnp.asarray(np.where(blk[:, None] == blk[None, :], 0.0, -1e30),
                       dtype=jnp.float32)

    kernel = functools.partial(_intra_attn_kernel, num_heads=num_heads, eps=eps)
    y2d = pl.pallas_call(
        kernel,
        out_shape=jax.ShapeDtypeStruct((NL, E), x_lne.dtype),
    )(x2d, wqkv, bqkv, wo, bo, gamma, beta, mask)

    return jnp.transpose(y2d.reshape(N, L, E), (1, 0, 2))


# ----------------------------------------------------------------------------
# Parameters: raw (PyTorch-equivalent) and packed (kernel-friendly) forms.
# ----------------------------------------------------------------------------
def init_raw_params(key, embed_size):
    """Deterministic synthetic parameters mirroring nn.MultiheadAttention + LayerNorm."""
    E = embed_size
    k1, k2, k3, k4 = jax.random.split(key, 4)
    in_proj_w = jax.random.normal(k1, (3 * E, E), jnp.float32) * (1.0 / math.sqrt(E))
    in_proj_b = jax.random.normal(k2, (3 * E,), jnp.float32) * 0.02
    out_w = jax.random.normal(k3, (E, E), jnp.float32) * (1.0 / math.sqrt(E))
    out_b = jax.random.normal(k4, (E,), jnp.float32) * 0.02
    gamma = jnp.ones((E,), jnp.float32)   # LayerNorm weight
    beta = jnp.zeros((E,), jnp.float32)   # LayerNorm bias
    return in_proj_w, in_proj_b, out_w, out_b, gamma, beta


def pack_params(raw, num_heads):
    """Fuse QKV into one (E, 3E) weight and fold the 1/sqrt(hd) scale into Q."""
    in_w, in_b, out_w, out_b, gamma, beta = raw
    E = out_w.shape[0]
    hd = E // num_heads
    scale = 1.0 / math.sqrt(hd)
    wq = in_w[0 * E:1 * E].T * scale
    wk = in_w[1 * E:2 * E].T
    wv = in_w[2 * E:3 * E].T
    wqkv = jnp.concatenate([wq, wk, wv], axis=1)                       # (E, 3E)
    bqkv = jnp.concatenate([in_b[:E] * scale, in_b[E:2 * E], in_b[2 * E:]])
    bqkv = bqkv.reshape(1, 3 * E)
    wo = out_w.T
    bo = out_b.reshape(1, E)
    return wqkv, bqkv, wo, bo, gamma.reshape(1, E), beta.reshape(1, E)


# ----------------------------------------------------------------------------
# Pure-JAX reference (PyTorch MultiheadAttention + residual + LayerNorm semantics)
# ----------------------------------------------------------------------------
def reference(x, raw, *, num_heads, eps=1e-5):
    in_w, in_b, out_w, out_b, gamma, beta = raw
    L, N, E = x.shape
    hd = E // num_heads
    wq, wk, wv = in_w[:E], in_w[E:2 * E], in_w[2 * E:]
    bq, bk, bv = in_b[:E], in_b[E:2 * E], in_b[2 * E:]
    q = (x @ wq.T + bq) * (1.0 / math.sqrt(hd))
    k = x @ wk.T + bk
    v = x @ wv.T + bv
    qh = q.reshape(L, N, num_heads, hd)
    kh = k.reshape(L, N, num_heads, hd)
    vh = v.reshape(L, N, num_heads, hd)
    s = jnp.einsum('lnhd,mnhd->nhlm', qh, kh)
    p = jax.nn.softmax(s, axis=-1)
    ctx = jnp.einsum('nhlm,mnhd->lnhd', p, vh).reshape(L, N, E)
    attn = ctx @ out_w.T + out_b
    y = x + attn
    mean = jnp.mean(y, axis=-1, keepdims=True)
    var = jnp.mean((y - mean) ** 2, axis=-1, keepdims=True)
    return (y - mean) * lax.rsqrt(var + eps) * gamma + beta


if __name__ == "__main__":
    # TODO(synk): dropout (p=0.3) is omitted — eval-mode (identity) semantics; the
    # pretrained ResNet18 / I3D encoders of eng_network are out of kernel scope.
    embed_size, num_heads = 32, 4
    seq_len, batch = 8, 2

    key = jax.random.PRNGKey(0)
    kx, kp = jax.random.split(key)
    x = jax.random.normal(kx, (seq_len, batch, embed_size), jnp.float32)
    raw = init_raw_params(kp, embed_size)
    packed = pack_params(raw, num_heads)

    out = jax.block_until_ready(
        intra_modality_attention(x, packed, num_heads=num_heads))
    ref = jax.block_until_ready(reference(x, raw, num_heads=num_heads))

    assert out.shape == (seq_len, batch, embed_size)
    err = float(jnp.max(jnp.abs(out - ref)))
    assert jnp.allclose(out, ref, atol=1e-4, rtol=1e-4), err
    print("KERNEL_OK")
</pallas_src>

<mosaic_0001>
module attributes {stable_mosaic.version = 11 : i64} {
  func.func @_intra_attn_kernel(%arg0: memref<16x32xf32, #tpu.memory_space<vmem>>, %arg1: memref<32x96xf32, #tpu.memory_space<vmem>>, %arg2: memref<1x96xf32, #tpu.memory_space<vmem>>, %arg3: memref<32x32xf32, #tpu.memory_space<vmem>>, %arg4: memref<1x32xf32, #tpu.memory_space<vmem>>, %arg5: memref<1x32xf32, #tpu.memory_space<vmem>>, %arg6: memref<1x32xf32, #tpu.memory_space<vmem>>, %arg7: memref<64x64xf32, #tpu.memory_space<vmem>>, %arg8: memref<16x32xf32, #tpu.memory_space<vmem>>) attributes {dimension_semantics = [], scalar_prefetch = 0 : i64, scratch_operands = 0 : i64, tpu.core_type = #tpu.core_type<tc>} {
    %c0 = arith.constant 0 : index
    %c0_0 = arith.constant 0 : index
    %0 = vector.load %arg0[%c0, %c0_0] : memref<16x32xf32, #tpu.memory_space<vmem>>, vector<16x32xf32>
    %c0_1 = arith.constant 0 : index
    %c0_2 = arith.constant 0 : index
    %1 = vector.load %arg1[%c0_1, %c0_2] : memref<32x96xf32, #tpu.memory_space<vmem>>, vector<32x96xf32>
    %c0_3 = arith.constant 0 : index
    %c0_4 = arith.constant 0 : index
    %2 = vector.load %arg2[%c0_3, %c0_4] : memref<1x96xf32, #tpu.memory_space<vmem>>, vector<1x96xf32>
    %c0_5 = arith.constant 0 : index
    %c0_6 = arith.constant 0 : index
    %3 = vector.load %arg3[%c0_5, %c0_6] : memref<32x32xf32, #tpu.memory_space<vmem>>, vector<32x32xf32>
    %c0_7 = arith.constant 0 : index
    %c0_8 = arith.constant 0 : index
    %4 = vector.load %arg4[%c0_7, %c0_8] : memref<1x32xf32, #tpu.memory_space<vmem>>, vector<1x32xf32>
    %c0_9 = arith.constant 0 : index
    %c0_10 = arith.constant 0 : index
    %5 = vector.load %arg5[%c0_9, %c0_10] : memref<1x32xf32, #tpu.memory_space<vmem>>, vector<1x32xf32>
    %c0_11 = arith.constant 0 : index
    %c0_12 = arith.constant 0 : index
    %6 = vector.load %arg6[%c0_11, %c0_12] : memref<1x32xf32, #tpu.memory_space<vmem>>, vector<1x32xf32>
    %c0_13 = arith.constant 0 : index
    %c0_14 = arith.constant 0 : index
    %7 = vector.load %arg7[%c0_13, %c0_14] : memref<64x64xf32, #tpu.memory_space<vmem>>, vector<64x64xf32>
    %cst = arith.constant dense<0.000000e+00> : vector<16x96xf32>
    %8 = tpu.matmul %0, %1, %cst {dimension_numbers = #tpu.dot_dimension_numbers<[1], [0], [0], [1], [0, 0, 1, 1], [], []>} : vector<16x32xf32>, vector<32x96xf32>, vector<16x96xf32> -> vector<16x96xf32>
    %9 = vector.broadcast %2 : vector<1x96xf32> to vector<16x96xf32>
    %10 = arith.addf %8, %9 : vector<16x96xf32>
    %11 = vector.extract_strided_slice %10 {offsets = [0, 0], sizes = [16, 32], strides = [1, 1]} : vector<16x96xf32> to vector<16x32xf32>
    %12 = vector.extract_strided_slice %10 {offsets = [0, 32], sizes = [16, 32], strides = [1, 1]} : vector<16x96xf32> to vector<16x32xf32>
    %13 = vector.extract_strided_slice %10 {offsets = [0, 64], sizes = [16, 32], strides = [1, 1]} : vector<16x96xf32> to vector<16x32xf32>
    %14 = vector.extract_strided_slice %11 {offsets = [0, 0], sizes = [16, 8], strides = [1, 1]} : vector<16x32xf32> to vector<16x8xf32>
    %15 = vector.extract_strided_slice %11 {offsets = [0, 8], sizes = [16, 8], strides = [1, 1]} : vector<16x32xf32> to vector<16x8xf32>
    %16 = vector.extract_strided_slice %11 {offsets = [0, 16], sizes = [16, 8], strides = [1, 1]} : vector<16x32xf32> to vector<16x8xf32>
    %17 = vector.extract_strided_slice %11 {offsets = [0, 24], sizes = [16, 8], strides = [1, 1]} : vector<16x32xf32> to vector<16x8xf32>
    %18 = tpu.concatenate %14, %15, %16, %17 in 0 : vector<16x8xf32>, vector<16x8xf32>, vector<16x8xf32>, vector<16x8xf32> -> vector<64x8xf32>
    %19 = vector.extract_strided_slice %12 {offsets = [0, 0], sizes = [16, 8], strides = [1, 1]} : vector<16x32xf32> to vector<16x8xf32>
    %20 = vector.extract_strided_slice %12 {offsets = [0, 8], sizes = [16, 8], strides = [1, 1]} : vector<16x32xf32> to vector<16x8xf32>
    %21 = vector.extract_strided_slice %12 {offsets = [0, 16], sizes = [16, 8], strides = [1, 1]} : vector<16x32xf32> to vector<16x8xf32>
    %22 = vector.extract_strided_slice %12 {offsets = [0, 24], sizes = [16, 8], strides = [1, 1]} : vector<16x32xf32> to vector<16x8xf32>
    %23 = tpu.concatenate %19, %20, %21, %22 in 0 : vector<16x8xf32>, vector<16x8xf32>, vector<16x8xf32>, vector<16x8xf32> -> vector<64x8xf32>
    %24 = vector.extract_strided_slice %13 {offsets = [0, 0], sizes = [16, 8], strides = [1, 1]} : vector<16x32xf32> to vector<16x8xf32>
    %25 = vector.extract_strided_slice %13 {offsets = [0, 8], sizes = [16, 8], strides = [1, 1]} : vector<16x32xf32> to vector<16x8xf32>
    %26 = vector.extract_strided_slice %13 {offsets = [0, 16], sizes = [16, 8], strides = [1, 1]} : vector<16x32xf32> to vector<16x8xf32>
    %27 = vector.extract_strided_slice %13 {offsets = [0, 24], sizes = [16, 8], strides = [1, 1]} : vector<16x32xf32> to vector<16x8xf32>
    %28 = tpu.concatenate %24, %25, %26, %27 in 0 : vector<16x8xf32>, vector<16x8xf32>, vector<16x8xf32>, vector<16x8xf32> -> vector<64x8xf32>
    %cst_15 = arith.constant dense<0.000000e+00> : vector<64x64xf32>
    %29 = tpu.matmul %18, %23, %cst_15 {dimension_numbers = #tpu.dot_dimension_numbers<[1], [1], [0], [0], [0, 0, 1, 0], [], []>} : vector<64x8xf32>, vector<64x8xf32>, vector<64x64xf32> -> vector<64x64xf32>
    %30 = arith.addf %29, %7 : vector<64x64xf32>
    %cst_16 = arith.constant dense<0xFF800000> : vector<64xf32>
    %31 = vector.multi_reduction <maximumf>, %30, %cst_16 [1] : vector<64x64xf32> to vector<64xf32>
    %32 = vector.shape_cast %31 : vector<64xf32> to vector<64x1xf32>
    %33 = vector.broadcast %32 : vector<64x1xf32> to vector<64x64xf32>
    %34 = arith.subf %30, %33 : vector<64x64xf32>
    %35 = math.exp %34 : vector<64x64xf32>
    %cst_17 = arith.constant dense<0.000000e+00> : vector<64xf32>
    %36 = vector.multi_reduction <add>, %35, %cst_17 [1] : vector<64x64xf32> to vector<64xf32>
    %37 = vector.shape_cast %36 : vector<64xf32> to vector<64x1xf32>
    %38 = tpu.reciprocal %37 : vector<64x1xf32> -> vector<64x1xf32>
    %39 = vector.broadcast %38 : vector<64x1xf32> to vector<64x64xf32>
    %40 = arith.mulf %35, %39 : vector<64x64xf32>
    %cst_18 = arith.constant dense<0.000000e+00> : vector<64x8xf32>
    %41 = tpu.matmul %40, %28, %cst_18 {dimension_numbers = #tpu.dot_dimension_numbers<[1], [0], [0], [1], [0, 0, 1, 1], [], []>} : vector<64x64xf32>, vector<64x8xf32>, vector<64x8xf32> -> vector<64x8xf32>
    %42 = vector.extract_strided_slice %41 {offsets = [0, 0], sizes = [16, 8], strides = [1, 1]} : vector<64x8xf32> to vector<16x8xf32>
    %43 = vector.extract_strided_slice %41 {offsets = [16, 0], sizes = [16, 8], strides = [1, 1]} : vector<64x8xf32> to vector<16x8xf32>
    %44 = vector.extract_strided_slice %41 {offsets = [32, 0], sizes = [16, 8], strides = [1, 1]} : vector<64x8xf32> to vector<16x8xf32>
    %45 = vector.extract_strided_slice %41 {offsets = [48, 0], sizes = [16, 8], strides = [1, 1]} : vector<64x8xf32> to vector<16x8xf32>
    %46 = tpu.concatenate %42, %43, %44, %45 in 1 : vector<16x8xf32>, vector<16x8xf32>, vector<16x8xf32>, vector<16x8xf32> -> vector<16x32xf32>
    %cst_19 = arith.constant dense<0.000000e+00> : vector<16x32xf32>
    %47 = tpu.matmul %46, %3, %cst_19 {dimension_numbers = #tpu.dot_dimension_numbers<[1], [0], [0], [1], [0, 0, 1, 1], [], []>} : vector<16x32xf32>, vector<32x32xf32>, vector<16x32xf32> -> vector<16x32xf32>
    %48 = vector.broadcast %4 : vector<1x32xf32> to vector<16x32xf32>
    %49 = arith.addf %47, %48 : vector<16x32xf32>
    %50 = arith.addf %0, %49 : vector<16x32xf32>
    %cst_20 = arith.constant dense<0.000000e+00> : vector<16xf32>
    %51 = vector.multi_reduction <add>, %50, %cst_20 [1] : vector<16x32xf32> to vector<16xf32>
    %52 = vector.shape_cast %51 : vector<16xf32> to vector<16x1xf32>
    %cst_21 = arith.constant 3.200000e+01 : f32
    %53 = vector.broadcast %cst_21 : f32 to vector<16x1xf32>
    %54 = arith.divf %52, %53 : vector<16x1xf32>
    %55 = vector.broadcast %54 : vector<16x1xf32> to vector<16x32xf32>
    %56 = arith.subf %50, %55 : vector<16x32xf32>
    %57 = arith.mulf %56, %56 : vector<16x32xf32>
    %cst_22 = arith.constant dense<0.000000e+00> : vector<16xf32>
    %58 = vector.multi_reduction <add>, %57, %cst_22 [1] : vector<16x32xf32> to vector<16xf32>
    %59 = vector.shape_cast %58 : vector<16xf32> to vector<16x1xf32>
    %cst_23 = arith.constant 3.200000e+01 : f32
    %60 = vector.broadcast %cst_23 : f32 to vector<16x1xf32>
    %61 = arith.divf %59, %60 : vector<16x1xf32>
    %cst_24 = arith.constant 9.99999974E-6 : f32
    %62 = vector.broadcast %cst_24 : f32 to vector<16x1xf32>
    %63 = arith.addf %61, %62 : vector<16x1xf32>
    %64 = math.rsqrt %63 : vector<16x1xf32>
    %65 = vector.broadcast %64 : vector<16x1xf32> to vector<16x32xf32>
    %66 = arith.mulf %56, %65 : vector<16x32xf32>
    %67 = vector.broadcast %5 : vector<1x32xf32> to vector<16x32xf32>
    %68 = arith.mulf %66, %67 : vector<16x32xf32>
    %69 = vector.broadcast %6 : vector<1x32xf32> to vector<16x32xf32>
    %70 = arith.addf %68, %69 : vector<16x32xf32>
    %c0_25 = arith.constant 0 : index
    %c0_26 = arith.constant 0 : index
    %71 = vector.load %arg8[%c0_25, %c0_26] : memref<16x32xf32, #tpu.memory_space<vmem>>, vector<16x32xf32>
    tpu.vector_store %arg8[%c0_25, %c0_26], %70 {strides = array<i32>} : memref<16x32xf32, #tpu.memory_space<vmem>>, vector<16x32xf32>,
    return
  }
}

</mosaic_0001>

<bundles_post_ra>
// kernel: tpu_custom_call.1
= control target key start
LH: loop header
LB: loop body
LE: loop exit
PB: predicated region body
PF: predicated region fallthrough
CT: control target
= control target key end

     0   :  { %13 = vsyncpa [#allocation3], 0  ;;  %s1216_s0 = inlined_call_operand.hbm [shape: f32[16,32], index: 0, kind: input, shape index: {}]   ;;  %s1217_s1 = inlined_call_operand.hbm [shape: f32[32,96], index: 1, kind: input, shape index: {}]   ;;  %s1218_s2 = inlined_call_operand.vmem [shape: f32[1,96], index: 2, kind: input, shape index: {}]   ;;  %s1219_s3 = inlined_call_operand.hbm [shape: f32[32,32], index: 3, kind: input, shape index: {}]   ;;  %s1220_s4 = inlined_call_operand.vmem [shape: f32[1,32], index: 4, kind: input, shape index: {}]   ;;  %s1221_s5 = inlined_call_operand.vmem [shape: f32[1,32], index: 5, kind: input, shape index: {}]   ;;  %s1222_s6 = inlined_call_operand.vmem [shape: f32[1,32], index: 6, kind: input, shape index: {}]   ;;  %s1223_s7 = inlined_call_operand.hbm [shape: f32[64,64], index: 7, kind: input, shape index: {}]   ;;  %s1224_s8 = inlined_call_operand.hbm [shape: f32[16,32], index: 8, kind: output, shape index: {}]  }
   0x1   :  { %14 = vsyncpa [#allocation6], 0 }
   0x2   :  { %15 = vsyncpa [#allocation9], 0 }
   0x3   :  { %16 = vsyncpa [#allocation4], 0  ;;  %s34_s29 = sshll.u32 %s1217_s1, 4  ;;  %s933_s30 = smov [#allocation5]   ;;  %s35_s29 = int_to_ptr.hbm [resolvable:$true] %s34_s29 }
   0x4   :  { %s36_s9 = sshll.u32 %s933_s30, 4  ;;  %s21_s12 = sshll.u32 %s1216_s0, 4  ;;  %s37_s9 = int_to_ptr.vmem [resolvable:$true] %s36_s9  ;;  %s22_s12 = int_to_ptr.hbm [resolvable:$true] %s21_s12 }
   0x5   :  { %s934_s13 = smov 128   ;;  %s935_s14 = smov 8  }
   0x6   :  { %42 = dma.hbm_to_vmem [thread:$0]  %s35_s29, 512, %s37_s9, [#allocation6], %s934_s13, %s934_s13, %s935_s14  }
   0x7   :  { %s936_s15 = smov [#allocation2]   ;;  %s49_s1 = sshll.u32 %s1219_s3, 4  ;;  %s50_s1 = int_to_ptr.hbm [resolvable:$true] %s49_s1 }
   0x8   :  { %s23_s16 = sshll.u32 %s936_s15, 4  ;;  %s68_s20 = sshll.u32 %s1223_s7, 4  ;;  %s24_s16 = int_to_ptr.vmem [resolvable:$true] %s23_s16  ;;  %s69_s20 = int_to_ptr.hbm [resolvable:$true] %s68_s20 }
   0x9   :  { %29 = dma.hbm_to_vmem [thread:$0]  %s22_s12, 256, %s24_s16, [#allocation3], %s934_s13, %s934_s13, %s935_s14  }
   0xa   :  { %s937_s21 = smov [#allocation7]   ;;  %s938_s23 = smov [#allocation8]  }
   0xb   :  { %s51_s22 = sshll.u32 %s937_s21, 4  ;;  %s70_s3 = sshll.u32 %s938_s23, 4  ;;  %s52_s22 = int_to_ptr.vmem [resolvable:$true] %s51_s22  ;;  %s71_s3 = int_to_ptr.vmem [resolvable:$true] %s70_s3 }
   0xc   :  { %57 = dma.hbm_to_vmem [thread:$0]  %s50_s1, 512, %s52_s22, [#allocation6], %s934_s13, %s934_s13, %s935_s14  }
   0xd   :  { %76 = dma.hbm_to_vmem [thread:$0]  %s69_s20, 1024, %s71_s3, [#allocation9], %s934_s13, %s934_s13, %s935_s14  }
   0xe   :  { %925 = dma.done.wait [#allocation3], 256  }
   0xf   :  { %926 = vsyncadd [#allocation3], 4294967040 }
  0x10   :  { %927 = dma.done.wait [#allocation6], 1024  }
  0x11   :  { %928 = vsyncadd [#allocation6], 4294966272 }
  0x12   :  { %929 = dma.done.wait [#allocation9], 1024  }
  0x13   :  { %930 = vsyncadd [#allocation9], 4294966272  ;;  %v98_v0 = vld [vmem:[#allocation5 + $0x18] sm:$0xff]  ;;  %v97_v1 = vld [vmem:[#allocation5 + $0x10] sm:$0xff]  ;;  %vm118_vm0 = vcmask 261120   ;;  %s939_s25 = smov 120  }
  0x14   :  { %137 = vmatpush.msra.mxu3 %v98_v0  ;;  %v96_v2 = vld [vmem:[#allocation5 + $0x8] sm:$0xff]  ;;  %v95_v3 = vld [vmem:[#allocation5] sm:$0xff]  ;;  %v1017_v4 = vld [vmem:[#allocation2] sm:$0xff]  ;;  %s940_s26 = smov 112   ;;  %s941_s27 = smov 104   ;;  %vm178_vm1 = vcmask 64512  }
  0x15   :  { %v1021_v5 = vld [vmem:[#allocation2 + $0x8] sm:$0xff]  ;;  %v763_v7 = vld [vmem:[%s1218_s2] ss:$0 sm:$0xff]  ;;  %s942_s2 = smov 96   ;;  %v107_v25 = vld [vmem:[#allocation8] sm:$0xff]  ;;  %vm252_vm2 = vcmask 523264  }
  0x16   :  { %138 = vmatpush.msra.mxu3 %v97_v1  ;;  %v111_v30 = vld [vmem:[#allocation8 + $0x20] sm:$0xff]  ;;  %v108_v31 = vld [vmem:[#allocation8 + $0x8] sm:$0xff]  ;;  %v109_v41 = vld [vmem:[#allocation8 + $0x10] sm:$0xff]  ;;  %s943_s28 = smov 64   ;;  %s944_s29 = smov 24  }
  0x17   :  { %v112_v32 = vld [vmem:[#allocation8 + $0x28] sm:$0xff]  ;;  %v110_v46 = vld [vmem:[#allocation8 + $0x18] sm:$0xff]  ;;  %v113_v56 = vld [vmem:[#allocation8 + $0x30] sm:$0xff]  ;;  %s945_s30 = smov 16   ;;  %s669_s1 = sshll.u32 %s1224_s8, 4  ;;  %s670_s1 = int_to_ptr.hbm [resolvable:$true] %s669_s1 }
  0x18   :  { %139 = vmatpush.msra.mxu3 %v96_v2  ;;  %v114_v50 = vld [vmem:[#allocation8 + $0x38] sm:$0xff] }
  0x1a   :  { %140 = vmatpush.msra.mxu3 %v95_v3 }
  0x1b   :  { %684 = vmatmul.msk.f32.vlgmr.msra.gmra.mxu3 %vm118_vm0, %v1017_v4 }
  0x23   :  { %685 = vmatmul.msk.f32.gmra.mxu3 %vm118_vm0, %v1021_v5 }
  0x9e   :  { %v142_v6 = vpop.f32.mrf.mxu3 }
  0x9f   :  { %v1033_v10 = vadd.f32 %v763_v7, %v142_v6 }
  0xa6   :  { %v145_v8 = vpop.f32.mrf.mxu3 }
  0xa7   :  { %v1028_v9 = vadd.f32 %v763_v7, %v145_v8 }
  0xa9   :  { %152 = vrot.lane.b32.xlu2 %v1028_v9, %s939_s25  ;;  %156 = vrot.lane.b32.xlu1 %v1028_v9, %s940_s26 }
  0xaa   :  { %160 = vrot.lane.b32.xlu0 %v1028_v9, %s941_s27 }
  0xb1   :  { %150 = vrot.lane.b32.xlu2 %v1033_v10, %s939_s25  ;;  %154 = vrot.lane.b32.xlu1 %v1033_v10, %s940_s26 }
  0xb2   :  { %158 = vrot.lane.b32.xlu0 %v1033_v10, %s941_s27 }
 0x103   :  { %v1038_v11 = vpop.permute.xlu2 %152 }
 0x10b   :  { %v1046_v14 = vpop.permute.xlu2 %150 }
 0x11b   :  { %v1040_v12 = vpop.permute.xlu1 %156 }
 0x11c   :  { %v1042_v13 = vpop.permute.xlu0 %160  ;;  %172 = vrot.lane.b32.xlu2 %v1040_v12, %s942_s2 }
 0x11d   :  { %176 = vrot.lane.b32.xlu0 %v1042_v13, %s942_s2 }
 0x123   :  { %v1048_v15 = vpop.permute.xlu1 %154 }
 0x124   :  { %v1050_v16 = vpop.permute.xlu0 %158  ;;  %166 = vrot.lane.b32.xlu2 %v1046_v14, %s942_s2  ;;  %v748_v52 = vpack.i.bf16 %v1048_v15, %v1040_v12 }
 0x125   :  { %170 = vrot.lane.b32.xlu0 %v1048_v15, %s942_s2  ;;  %174 = vrot.lane.b32.xlu1 %v1050_v16, %s942_s2  ;;  %v743_v55 = vpack.i.bf16 %v1050_v16, %v1042_v13 }
 0x12d   :  { %164 = vrot.lane.b32.xlu0 %v1028_v9, %s942_s2  ;;  %168 = vrot.lane.b32.xlu1 %v1038_v11, %s942_s2 }
 0x135   :  { %162 = vrot.lane.b32.xlu1 %v1033_v10, %s942_s2 }
 0x176   :  { %v173_v19 = vpop.permute.xlu2 %172 }
 0x17e   :  { %v167_v22 = vpop.permute.xlu2 %166 }
 0x18f   :  { %v177_v17 = vpop.permute.xlu0 %176 }
 0x190   :  { %686 = vmatpush.xpose.msk.msra.mxu0 %vm178_vm1, %v177_v17  ;;  %712 = vmatpush.xpose.msk.msra.mxu1 %vm178_vm1, %v177_v17  ;;  %v758_v17 = vpack.i.bf16 %v1033_v10, %v1028_v9 }
 0x197   :  { %v175_v18 = vpop.permute.xlu1 %174  ;;  %v171_v20 = vpop.permute.xlu0 %170 }
 0x198   :  { %687 = vmatpush.xpose.msk.msra.mxu0 %vm178_vm1, %v175_v18  ;;  %713 = vmatpush.xpose.msk.msra.mxu1 %vm178_vm1, %v175_v18 }
 0x19c   :  { %688 = vmatpush.xpose.msk.msra.mxu0 %vm178_vm1, %v173_v19  ;;  %714 = vmatpush.xpose.msk.msra.mxu1 %vm178_vm1, %v173_v19 }
 0x19f   :  { %v169_v21 = vpop.permute.xlu1 %168  ;;  %v165_v23 = vpop.permute.xlu0 %164 }
 0x1a0   :  { %689 = vmatpush.xpose.msk.msra.mxu0 %vm178_vm1, %v171_v20  ;;  %715 = vmatpush.xpose.msk.msra.mxu1 %vm178_vm1, %v171_v20 }
 0x1a4   :  { %690 = vmatpush.xpose.msk.msra.mxu0 %vm178_vm1, %v169_v21  ;;  %716 = vmatpush.xpose.msk.msra.mxu1 %vm178_vm1, %v169_v21 }
 0x1a7   :  { %v163_v24 = vpop.permute.xlu1 %162 }
 0x1a8   :  { %691 = vmatpush.xpose.msk.msra.mxu0 %vm178_vm1, %v167_v22  ;;  %717 = vmatpush.xpose.msk.msra.mxu1 %vm178_vm1, %v167_v22  ;;  %v753_v22 = vpack.i.bf16 %v1046_v14, %v1038_v11 }
 0x1ac   :  { %692 = vmatpush.xpose.msk.msra.mxu0 %vm178_vm1, %v165_v23  ;;  %718 = vmatpush.xpose.msk.msra.mxu1 %vm178_vm1, %v165_v23 }
 0x1b0   :  { %693 = vmatpush.xpose.msk.msra.mxu0 %vm178_vm1, %v163_v24  ;;  %719 = vmatpush.xpose.msk.msra.mxu1 %vm178_vm1, %v163_v24 }
 0x1b3   :  { %694 = vmatmul.msk.f32.vlgmr.msra.gmra.mxu0 %vm178_vm1, %v1033_v10  ;;  %698 = vmatmul.msk.f32.vlgmr.msra.gmra.mxu1 %vm178_vm1, %v1048_v15 }
 0x1bb   :  { %695 = vmatmul.msk.f32.gmra.mxu0 %vm178_vm1, %v1028_v9  ;;  %699 = vmatmul.msk.f32.gmra.mxu1 %vm178_vm1, %v1040_v12 }
 0x1c3   :  { %696 = vmatmul.msk.f32.gmra.mxu0 %vm178_vm1, %v1046_v14  ;;  %700 = vmatmul.msk.f32.gmra.mxu1 %vm178_vm1, %v1050_v16 }
 0x1cb   :  { %697 = vmatmul.msk.f32.gmra.mxu0 %vm178_vm1, %v1038_v11  ;;  %701 = vmatmul.msk.f32.gmra.mxu1 %vm178_vm1, %v1042_v13 }
 0x230   :  { %v228_v26 = vpop.f32.mrf.mxu0  ;;  %v240_v27 = vpop.f32.mrf.mxu1 }
 0x231   :  { %v229_v28 = vadd.f32 %v228_v26, %v107_v25  ;;  %v1091_v33 = vadd.f32 %v240_v27, %v111_v30 }
 0x233   :  { %v253_v29 = vsel %vm252_vm2, %v229_v28, -inf  ;;  %v265_v40 = vsel %vm252_vm2, %v1091_v33, -inf }
 0x234   :  { %254 = vmax.xlane.f32.xlu2 %v253_v29 }
 0x238   :  { %v231_v34 = vpop.f32.mrf.mxu0  ;;  %v243_v35 = vpop.f32.mrf.mxu1 }
 0x239   :  { %v232_v36 = vadd.f32 %v231_v34, %v108_v31  ;;  %v1093_v37 = vadd.f32 %v243_v35, %v112_v32 }
 0x23b   :  { %v268_v38 = vsel %vm252_vm2, %v1093_v37, -inf  ;;  %v256_v39 = vsel %vm252_vm2, %v232_v36, -inf }
 0x23c   :  { %269 = vmax.xlane.f32.xlu1 %v268_v38  ;;  %257 = vmax.xlane.f32.xlu0 %v256_v39 }
 0x23d   :  { %266 = vmax.xlane.f32.xlu2 %v265_v40 }
 0x240   :  { %v234_v42 = vpop.f32.mrf.mxu0  ;;  %v246_v44 = vpop.f32.mrf.mxu1 }
 0x241   :  { %v235_v43 = vadd.f32 %v234_v42, %v109_v41  ;;  %v247_v57 = vadd.f32 %v246_v44, %v113_v56 }
 0x243   :  { %v259_v45 = vsel %vm252_vm2, %v235_v43, -inf  ;;  %v271_v58 = vsel %vm252_vm2, %v247_v57, -inf }
 0x244   :  { %260 = vmax.xlane.f32.xlu1 %v259_v45 }
 0x248   :  { %v237_v47 = vpop.f32.mrf.mxu0  ;;  %v249_v51 = vpop.f32.mrf.mxu1 }
 0x249   :  { %v238_v48 = vadd.f32 %v237_v47, %v110_v46  ;;  %v250_v53 = vadd.f32 %v249_v51, %v114_v50 }
 0x24b   :  { %v262_v49 = vsel %vm252_vm2, %v238_v48, -inf  ;;  %v274_v54 = vsel %vm252_vm2, %v250_v53, -inf }
 0x24c   :  { %263 = vmax.xlane.f32.xlu2 %v262_v49 }
 0x250   :  { %749 = vrot.lane.b32.xlu0 %v748_v52, %s943_s28 }
 0x254   :  { %275 = vmax.xlane.f32.xlu2 %v274_v54 }
 0x25d   :  { %744 = vrot.lane.b32.xlu1 %v743_v55, %s943_s28 }
 0x27a   :  { %272 = vmax.xlane.f32.xlu0 %v271_v58 }
 0x2a7   :  { %v255_v59 = vpop.xlane.xlu2 %254 }
 0x2a8   :  { %v277_v60 = vsub.f32 %v229_v28, %v255_v59 }
 0x2aa   :  { %v285_v61 = vmul.f32 1.442695, %v277_v60 }
 0x2ac   :  { %767 = vpow2.f32 %v285_v61 }
 0x2af   :  { %v270_v62 = vpop.xlane.xlu1 %269  ;;  %v258_v63 = vpop.xlane.xlu0 %257 }
 0x2b0   :  { %v278_v0 = vsub.f32 %v232_v36, %v258_v63  ;;  %v267_v23 = vpop.xlane.xlu2 %266  ;;  %v282_v32 = vsub.f32 %v1093_v37, %v270_v62 }
 0x2b1   :  { %v281_v29 = vsub.f32 %v1091_v33, %v267_v23 }
 0x2b2   :  { %v1110_v1 = vpop.eup %767  ;;  %v287_v2 = vmul.f32 1.442695, %v278_v0  ;;  %v295_v38 = vmul.f32 1.442695, %v282_v32 }
 0x2b3   :  { %v301_v3 = vsel %vm252_vm2, %v1110_v1, 0.0  ;;  %v293_v34 = vmul.f32 1.442695, %v281_v29 }
 0x2b4   :  { %302 = vadd.xlane.f32.xlu0 %v301_v3  ;;  %769 = vpow2.f32 %v287_v2 }
 0x2b7   :  { %v261_v6 = vpop.xlane.xlu1 %260 }
 0x2b8   :  { %v279_v7 = vsub.f32 %v235_v43, %v261_v6 }
 0x2ba   :  { %v289_v8 = vmul.f32 1.442695, %v279_v7  ;;  %v1114_v12 = vpop.eup %769 }
 0x2bb   :  { %v304_v13 = vsel %vm252_vm2, %v1114_v12, 0.0 }
 0x2bc   :  { %771 = vpow2.f32 %v289_v8  ;;  %305 = vadd.xlane.f32.xlu2 %v304_v13 }
 0x2bf   :  { %v264_v10 = vpop.xlane.xlu2 %263 }
 0x2c0   :  { %v280_v25 = vsub.f32 %v238_v48, %v264_v10 }
 0x2c2   :  { %v1118_v15 = vpop.eup %771  ;;  %v750_v20 = vpop.permute.xlu0 %749  ;;  %v291_v26 = vmul.f32 1.442695, %v280_v25 }
 0x2c3   :  { %v307_v16 = vsel %vm252_vm2, %v1118_v15, 0.0  ;;  %v751_v24 = vunpack.i.l.bf16 %v750_v20  ;;  %v752_v9 = vunpack.i.h.bf16 %v750_v20 }
 0x2c4   :  { %308 = vadd.xlane.f32.xlu1 %v307_v16  ;;  %773 = vpow2.f32 %v291_v26 }
 0x2c7   :  { %v276_v27 = vpop.xlane.xlu2 %275 }
 0x2c8   :  { %759 = vrot.lane.b32.xlu0 %v758_v17, %s943_s28  ;;  %v284_v28 = vsub.f32 %v250_v53, %v276_v27 }
 0x2ca   :  { %v299_v11 = vmul.f32 1.442695, %v284_v28  ;;  %v1129_v30 = vpop.eup %773 }
 0x2cb   :  { %v310_v36 = vsel %vm252_vm2, %v1129_v30, 0.0 }
 0x2cc   :  { %775 = vpow2.f32 %v299_v11 }
 0x2cf   :  { %v745_v18 = vpop.permute.xlu1 %744 }
 0x2d0   :  { %v746_v19 = vunpack.i.l.bf16 %v745_v18  ;;  %v747_v21 = vunpack.i.h.bf16 %v745_v18 }
 0x2d2   :  { %501 = vmatpush.msra.mxu2 %v746_v19  ;;  %720 = vmatpush.msrb.mxu3 %v746_v19  ;;  %v1134_v39 = vpop.eup %775 }
 0x2d3   :  { %v322_v37 = vsel %vm252_vm2, %v1134_v39, 0.0 }
 0x2d4   :  { %502 = vmatpush.msra.mxu2 %v747_v21  ;;  %721 = vmatpush.msrb.mxu3 %v747_v21 }
 0x2d5   :  { %754 = vrot.lane.b32.xlu2 %v753_v22, %s943_s28 }
 0x2d6   :  { %503 = vmatpush.msra.mxu2 %v751_v24  ;;  %722 = vmatpush.msrb.mxu3 %v751_v24 }
 0x2d8   :  { %504 = vmatpush.msra.mxu2 %v752_v9  ;;  %723 = vmatpush.msrb.mxu3 %v752_v9 }
 0x2ed   :  { %v273_v14 = vpop.xlane.xlu0 %272 }
 0x2ee   :  { %v283_v31 = vsub.f32 %v247_v57, %v273_v14 }
 0x2f0   :  { %v297_v35 = vmul.f32 1.442695, %v283_v31 }
 0x2f2   :  { %777 = vpow2.f32 %v297_v35  ;;  %311 = vadd.xlane.f32.xlu0 %v310_v36 }
 0x2f3   :  { %779 = vpow2.f32 %v293_v34 }
 0x2f4   :  { %781 = vpow2.f32 %v295_v38 }
 0x2f8   :  { %v1136_v33 = vpop.eup %777 }
 0x2f9   :  { %v319_v40 = vsel %vm252_vm2, %v1136_v33, 0.0  ;;  %v1142_v41 = vpop.eup %779 }
 0x2fa   :  { %320 = vadd.xlane.f32.xlu1 %v319_v40  ;;  %323 = vadd.xlane.f32.xlu0 %v322_v37  ;;  %v313_v42 = vsel %vm252_vm2, %v1142_v41, 0.0  ;;  %v1146_v43 = vpop.eup %781 }
 0x2fb   :  { %v316_v44 = vsel %vm252_vm2, %v1146_v43, 0.0 }
 0x2fe   :  { %314 = vadd.xlane.f32.xlu2 %v313_v42 }
 0x302   :  { %317 = vadd.xlane.f32.xlu1 %v316_v44 }
 0x327   :  { %v303_v45 = vpop.xlane.xlu0 %302 }
 0x328   :  { %783 = vrcp.f32 %v303_v45  ;;  %v336_v53 = vand.u32 2147483648, %v303_v45  ;;  %vm330_vm4 = vweird.f32 %v303_v45  ;;  %v334_v57 = vand.u32 2147483647, %v303_v45 }
 0x32a   :  { %v337_v62 = vor.u32 1.1754944e-38, %v336_v53  ;;  %vm335_vm6 = vcmp.eq.f32.partialorder %v334_v57, 8.507059e+37 }
 0x32e   :  { %v784_v46 = vpop.eup %783 }
 0x32f   :  { %v326_v47 = vmul.f32 %v784_v46, %v303_v45  ;;  %v306_v48 = vpop.xlane.xlu2 %305  ;;  %vm331_vm3 = vweird.f32 %v784_v46 }
 0x330   :  { %785 = vrcp.f32 %v306_v48  ;;  %vm332_vm5 = vmor %vm330_vm4, %vm331_vm3  ;;  %v350_v8 = vand.u32 2147483648, %v306_v48  ;;  %vm344_vm8 = vweird.f32 %v306_v48  ;;  %v348_v18 = vand.u32 2147483647, %v306_v48 }
 0x331   :  { %v327_v49 = vsub.f32 1.0, %v326_v47 }
 0x332   :  { %v351_v21 = vor.u32 1.1754944e-38, %v350_v8  ;;  %vm349_vm10 = vcmp.eq.f32.partialorder %v348_v18, 8.507059e+37 }
 0x333   :  { %v328_v50 = vmul.f32 %v784_v46, %v327_v49 }
 0x335   :  { %v329_v51 = vadd.f32 %v784_v46, %v328_v50 }
 0x336   :  { %v786_v52 = vpop.eup %785 }
 0x337   :  { %v309_v54 = vpop.xlane.xlu1 %308  ;;  %v340_v55 = vmul.f32 %v786_v52, %v306_v48  ;;  %v755_v56 = vpop.permute.xlu2 %754  ;;  %v333_v61 = vsel %vm332_vm5, %v784_v46, %v329_v51  ;;  %vm345_vm7 = vweird.f32 %v786_v52 }
 0x338   :  { %787 = vrcp.f32 %v309_v54  ;;  %v756_v58 = vunpack.i.l.bf16 %v755_v56  ;;  %v757_v63 = vunpack.i.h.bf16 %v755_v56  ;;  %v338_v3 = vsel %vm335_vm6, %v337_v62, %v333_v61  ;;  %vm346_vm9 = vmor %vm344_vm8, %vm345_vm7 }
 0x339   :  { %v341_v59 = vsub.f32 1.0, %v340_v55  ;;  %v437_v17 = vmul.f32 %v1110_v1, %v338_v3  ;;  %v364_v9 = vand.u32 2147483648, %v309_v54  ;;  %vm358_vm12 = vweird.f32 %v309_v54 }
 0x33a   :  { %v760_v60 = vpop.permute.xlu0 %759  ;;  %505 = vmatpush.msra.mxu2 %v756_v58  ;;  %724 = vmatpush.msrb.mxu3 %v756_v58  ;;  %v362_v25 = vand.u32 2147483647, %v309_v54 }
 0x33b   :  { %v761_v0 = vunpack.i.l.bf16 %v760_v60  ;;  %v342_v2 = vmul.f32 %v786_v52, %v341_v59  ;;  %v762_v16 = vunpack.i.h.bf16 %v760_v60  ;;  %v365_v26 = vor.u32 1.1754944e-38, %v364_v9 }
 0x33c   :  { %506 = vmatpush.msra.mxu2 %v757_v63  ;;  %725 = vmatpush.msrb.mxu3 %v757_v63  ;;  %vm363_vm14 = vcmp.eq.f32.partialorder %v362_v25, 8.507059e+37 }
 0x33d   :  { %v343_v7 = vadd.f32 %v786_v52, %v342_v2 }
 0x33e   :  { %v788_v6 = vpop.eup %787  ;;  %507 = vmatpush.msra.mxu2 %v761_v0  ;;  %726 = vmatpush.msrb.mxu3 %v761_v0 }
 0x33f   :  { %v354_v13 = vmul.f32 %v788_v6, %v309_v54  ;;  %v347_v20 = vsel %vm346_vm9, %v786_v52, %v343_v7  ;;  %vm359_vm11 = vweird.f32 %v788_v6 }
 0x340   :  { %508 = vmatpush.msra.mxu2 %v762_v16  ;;  %727 = vmatpush.msrb.mxu3 %v762_v16  ;;  %v352_v23 = vsel %vm349_vm10, %v351_v21, %v347_v20  ;;  %vm360_vm13 = vmor %vm358_vm12, %vm359_vm11 }
 0x341   :  { %v355_v19 = vsub.f32 1.0, %v354_v13  ;;  %702 = vmatmul.msk.f32.vlgmr.msra.gmra.mxu2 %vm252_vm2, %v437_v17  ;;  %v438_v10 = vmul.f32 %v1114_v12, %v352_v23 }
 0x343   :  { %v356_v22 = vmul.f32 %v788_v6, %v355_v19 }
 0x345   :  { %v357_v24 = vadd.f32 %v788_v6, %v356_v22 }
 0x347   :  { %v361_v1 = vsel %vm360_vm13, %v788_v6, %v357_v24 }
 0x348   :  { %v366_v27 = vsel %vm363_vm14, %v365_v26, %v361_v1 }
 0x349   :  { %703 = vmatmul.msk.f32.gmra.mxu2 %vm252_vm2, %v438_v10  ;;  %v439_v28 = vmul.f32 %v1118_v15, %v366_v27 }
 0x351   :  { %704 = vmatmul.msk.f32.gmra.mxu2 %vm252_vm2, %v439_v28 }
 0x365   :  { %v312_v29 = vpop.xlane.xlu0 %311 }
 0x366   :  { %789 = vrcp.f32 %v312_v29  ;;  %v378_v35 = vand.u32 2147483648, %v312_v29  ;;  %v376_v38 = vand.u32 2147483647, %v312_v29  ;;  %vm372_vm3 = vweird.f32 %v312_v29 }
 0x368   :  { %v379_v42 = vor.u32 1.1754944e-38, %v378_v35  ;;  %vm377_vm5 = vcmp.eq.f32.partialorder %v376_v38, 8.507059e+37  ;;  %v101_v38 = vld [vmem:[#allocation7 + $0x8] sm:$0xff] }
 0x36c   :  { %v790_v11 = vpop.eup %789 }
 0x36d   :  { %v368_v14 = vmul.f32 %v790_v11, %v312_v29  ;;  %v321_v31 = vpop.xlane.xlu1 %320  ;;  %v1156_v32 = vpop.xlane.xlu0 %323  ;;  %vm373_vm15 = vweird.f32 %v790_v11 }
 0x36e   :  { %791 = vrcp.f32 %v321_v31  ;;  %vm374_vm4 = vmor %vm372_vm3, %vm373_vm15  ;;  %v418_v49 = vand.u32 2147483647, %v321_v31  ;;  %v420_v50 = vand.u32 2147483648, %v321_v31  ;;  %vm414_vm7 = vweird.f32 %v321_v31 }
 0x36f   :  { %v369_v12 = vsub.f32 1.0, %v368_v14  ;;  %793 = vrcp.f32 %v1156_v32  ;;  %vm428_vm12 = vweird.f32 %v1156_v32  ;;  %v434_v6 = vand.u32 2147483648, %v1156_v32 }
 0x370   :  { %vm419_vm8 = vcmp.eq.f32.partialorder %v418_v49, 8.507059e+37  ;;  %v421_v59 = vor.u32 1.1754944e-38, %v420_v50  ;;  %v432_v8 = vand.u32 2147483647, %v1156_v32 }
 0x371   :  { %v370_v34 = vmul.f32 %v790_v11, %v369_v12  ;;  %v315_v36 = vpop.xlane.xlu2 %314  ;;  %v435_v23 = vor.u32 1.1754944e-38, %v434_v6 }
 0x372   :  { %795 = vrcp.f32 %v315_v36  ;;  %v392_v62 = vand.u32 2147483648, %v315_v36  ;;  %v390_v63 = vand.u32 2147483647, %v315_v36  ;;  %vm386_vm13 = vweird.f32 %v315_v36 }
 0x373   :  { %v371_v15 = vadd.f32 %v790_v11, %v370_v34 }
 0x374   :  { %v792_v40 = vpop.eup %791  ;;  %v393_v19 = vor.u32 1.1754944e-38, %v392_v62  ;;  %vm391_vm3 = vcmp.eq.f32.partialorder %v390_v63, 8.507059e+37  ;;  %v946_v62 = vmov 32.0  }
 0x375   :  { %v794_v37 = vpop.eup %793  ;;  %v410_v44 = vmul.f32 %v792_v40, %v321_v31  ;;  %v1159_v45 = vpop.xlane.xlu1 %317  ;;  %v375_v46 = vsel %vm374_vm4, %v790_v11, %v371_v15  ;;  %vm415_vm6 = vweird.f32 %v792_v40  ;;  %v100_v15 = vld [vmem:[#allocation7] sm:$0xff] }
 0x376   :  { %v424_v47 = vmul.f32 %v794_v37, %v1156_v32  ;;  %797 = vrcp.f32 %v1159_v45  ;;  %v380_v51 = vsel %vm377_vm5, %v379_v42, %v375_v46  ;;  %vm416_vm9 = vmor %vm414_vm7, %vm415_vm6  ;;  %vm429_vm11 = vweird.f32 %v794_v37 }
 0x377   :  { %v411_v48 = vsub.f32 1.0, %v410_v44  ;;  %v440_v54 = vmul.f32 %v1129_v30, %v380_v51  ;;  %vm1170_vm14 = vmor %vm428_vm12, %vm429_vm11  ;;  %vm433_vm5 = vcmp.eq.f32.partialorder %v432_v8, 8.507059e+37  ;;  %vm400_vm6 = vweird.f32 %v1159_v45 }
 0x378   :  { %v796_v52 = vpop.eup %795  ;;  %v425_v53 = vsub.f32 1.0, %v424_v47  ;;  %v404_v25 = vand.u32 2147483647, %v1159_v45  ;;  %799 = vrcp.f32 %v946_v62 }
 0x379   :  { %v412_v55 = vmul.f32 %v792_v40, %v411_v48  ;;  %v382_v56 = vmul.f32 %v796_v52, %v315_v36  ;;  %705 = vmatmul.msk.f32.gmra.mxu2 %vm252_vm2, %v440_v54  ;;  %vm387_vm10 = vweird.f32 %v796_v52  ;;  %v102_v36 = vld [vmem:[#allocation7 + $0x10] sm:$0xff] }
 0x37a   :  { %v426_v57 = vmul.f32 %v794_v37, %v425_v53  ;;  %vm388_vm15 = vmor %vm386_vm13, %vm387_vm10  ;;  %v764_v53 = vld [vmem:[%s1220_s4] ss:$0 sm:$0xff] }
 0x37b   :  { %v413_v58 = vadd.f32 %v792_v40, %v412_v55  ;;  %v383_v60 = vsub.f32 1.0, %v382_v56 }
 0x37c   :  { %v798_v61 = vpop.eup %797  ;;  %v427_v3 = vadd.f32 %v794_v37, %v426_v57 }
 0x37d   :  { %v384_v0 = vmul.f32 %v796_v52, %v383_v60  ;;  %v396_v30 = vmul.f32 %v798_v61, %v1159_v45  ;;  %v417_v2 = vsel %vm416_vm9, %v792_v40, %v413_v58  ;;  %vm401_vm4 = vweird.f32 %v798_v61 }
 0x37e   :  { %v422_v7 = vsel %vm419_vm8, %v421_v59, %v417_v2  ;;  %v431_v22 = vsel %vm1170_vm14, %v794_v37, %v427_v3  ;;  %vm402_vm7 = vmor %vm400_vm6, %vm401_vm4  ;;  %vm405_vm8 = vcmp.eq.f32.partialorder %v404_v25, 8.507059e+37  ;;  %vm563_vm9 = vcmask 195584   ;;  %v800_v63 = vpop.eup %799 }
 0x37f   :  { %v397_v13 = vsub.f32 1.0, %v396_v30  ;;  %v443_v16 = vmul.f32 %v1136_v33, %v422_v7  ;;  %v385_v17 = vadd.f32 %v796_v52, %v384_v0  ;;  %v406_v33 = vand.u32 2147483648, %v1159_v45 }
 0x380   :  { %v436_v1 = vsel %vm433_vm5, %v435_v23, %v431_v22  ;;  %v607_v0 = vmul.f32 32.0, %v800_v63 }
 0x381   :  { %v398_v20 = vmul.f32 %v798_v61, %v397_v13  ;;  %708 = vmatmul.msk.f32.vlgmr.msrb.gmra.mxu3 %vm252_vm2, %v443_v16  ;;  %v389_v21 = vsel %vm388_vm15, %v796_v52, %v385_v17  ;;  %v407_v27 = vor.u32 1.1754944e-38, %v406_v33  ;;  %v444_v28 = vmul.f32 %v1134_v39, %v436_v1 }
 0x382   :  { %v394_v24 = vsel %vm391_vm3, %v393_v19, %v389_v21  ;;  %v608_v30 = vsub.f32 1.0, %v607_v0 }
 0x383   :  { %v441_v9 = vmul.f32 %v1142_v41, %v394_v24  ;;  %v399_v10 = vadd.f32 %v798_v61, %v398_v20 }
 0x384   :  { %v609_v2 = vmul.f32 %v800_v63, %v608_v30 }
 0x385   :  { %706 = vmatmul.msk.f32.gmra.mxu2 %vm252_vm2, %v441_v9  ;;  %v403_v26 = vsel %vm402_vm7, %v798_v61, %v399_v10 }
 0x386   :  { %v408_v29 = vsel %vm405_vm8, %v407_v27, %v403_v26  ;;  %v610_v3 = vadd.f32 %v800_v63, %v609_v2 }
 0x387   :  { %v442_v11 = vmul.f32 %v1146_v43, %v408_v29  ;;  %v103_v43 = vld [vmem:[#allocation7 + $0x18] sm:$0xff] }
 0x388   :  { %587 = vmatpush.msra.mxu3 %v103_v43 }
 0x389   :  { %709 = vmatmul.msk.f32.gmra.mxu3 %vm252_vm2, %v444_v28 }
 0x38a   :  { %588 = vmatpush.msra.mxu3 %v102_v36 }
 0x38c   :  { %589 = vmatpush.msra.mxu3 %v101_v38 }
 0x38d   :  { %707 = vmatmul.msk.f32.gmra.mxu2 %vm252_vm2, %v442_v11  ;;  %vm560_vm2 = vcmask 130048  }
 0x38e   :  { %590 = vmatpush.msra.mxu3 %v100_v15 }
 0x3c4   :  { %v510_v41 = vpop.f32.mrf.mxu2 }
 0x3cc   :  { %v513_v14 = vpop.f32.mrf.mxu2 }
 0x3d4   :  { %v516_v31 = vpop.f32.mrf.mxu2 }
 0x3d5   :  { %536 = vrot.lane.b32.xlu2 %v516_v31, %s935_s14 }
 0x3fc   :  { %v519_v32 = vpop.f32.mrf.mxu2 }
 0x3fd   :  { %538 = vrot.lane.b32.xlu2 %v519_v32, %s935_s14 }
 0x404   :  { %v528_v12 = vpop.f32.mrf.mxu3 }
 0x405   :  { %552 = vrot.lane.b32.xlu0 %v528_v12, %s944_s29  ;;  %v766_v12 = vld [vmem:[%s1222_s6] ss:$0 sm:$0xff] }
 0x408   :  { %v522_v39 = vpop.f32.mrf.mxu2 }
 0x409   :  { %544 = vrot.lane.b32.xlu1 %v522_v39, %s945_s30 }
 0x40c   :  { %v531_v34 = vpop.f32.mrf.mxu3 }
 0x410   :  { %v525_v35 = vpop.f32.mrf.mxu2 }
 0x411   :  { %554 = vrot.lane.b32.xlu1 %v531_v34, %s944_s29  ;;  %546 = vrot.lane.b32.xlu0 %v525_v35, %s945_s30 }
 0x42f   :  { %v537_v40 = vpop.permute.xlu2 %536 }
 0x430   :  { %v558_v37 = vsel %vm178_vm1, %v510_v41, %v537_v40  ;;  %v765_v41 = vld [vmem:[%s1221_s5] ss:$0 sm:$0xff]  ;;  %s947_s5 = smov [#allocation10]  }
 0x431   :  { %s667_s16 = sshll.u32 %s947_s5, 4  ;;  %s668_s16 = int_to_ptr.vmem [resolvable:$true] %s667_s16 }
 0x457   :  { %v539_v47 = vpop.permute.xlu2 %538 }
 0x458   :  { %v559_v48 = vsel %vm178_vm1, %v513_v14, %v539_v47  ;;  %vm611_vm1 = vweird.f32 %v800_v63 }
 0x459   :  { %v612_v6 = vsel %vm611_vm1, %v800_v63, %v610_v3 }
 0x477   :  { %v553_v42 = vpop.permute.xlu0 %552 }
 0x47b   :  { %v545_v44 = vpop.permute.xlu1 %544 }
 0x47c   :  { %v561_v45 = vsel %vm560_vm2, %v558_v37, %v545_v44 }
 0x47d   :  { %v564_v46 = vsel %vm563_vm9, %v561_v45, %v553_v42 }
 0x47e   :  { %710 = vmatmul.msk.f32.vlgmr.msra.gmra.mxu3 %vm118_vm0, %v564_v46 }
 0x483   :  { %v555_v49 = vpop.permute.xlu1 %554  ;;  %v547_v50 = vpop.permute.xlu0 %546 }
 0x484   :  { %v562_v51 = vsel %vm560_vm2, %v559_v48, %v547_v50 }
 0x485   :  { %v565_v52 = vsel %vm563_vm9, %v562_v51, %v555_v49 }
 0x486   :  { %711 = vmatmul.msk.f32.gmra.mxu3 %vm118_vm0, %v565_v52 }
 0x501   :  { %v592_v54 = vpop.f32.mrf.mxu3 }
 0x502   :  { %v593_v55 = vadd.f32 %v764_v53, %v592_v54 }
 0x504   :  { %v598_v56 = vadd.f32 %v593_v55, %v1017_v4 }
 0x506   :  { %v600_v57 = vsel %vm118_vm0, %v598_v56, 0.0 }
 0x507   :  { %601 = vadd.xlane.f32.xlu2 %v600_v57 }
 0x509   :  { %v595_v58 = vpop.f32.mrf.mxu3 }
 0x50a   :  { %v596_v59 = vadd.f32 %v764_v53, %v595_v58 }
 0x50c   :  { %v599_v60 = vadd.f32 %v596_v59, %v1021_v5 }
 0x50e   :  { %v603_v61 = vsel %vm118_vm0, %v599_v60, 0.0 }
 0x50f   :  { %604 = vadd.xlane.f32.xlu0 %v603_v61 }
 0x57a   :  { %v602_v4 = vpop.xlane.xlu2 %601 }
 0x57b   :  { %v613_v7 = vmul.f32 %v612_v6, %v602_v4 }
 0x57d   :  { %v615_v8 = vsub.f32 %v598_v56, %v613_v7 }
 0x57f   :  { %v617_v13 = vmul.f32 %v615_v8, %v615_v8 }
 0x581   :  { %v619_v16 = vsel %vm118_vm0, %v617_v13, 0.0 }
 0x582   :  { %620 = vadd.xlane.f32.xlu1 %v619_v16  ;;  %v605_v5 = vpop.xlane.xlu0 %604 }
 0x583   :  { %v614_v17 = vmul.f32 %v612_v6, %v605_v5 }
 0x585   :  { %v616_v18 = vsub.f32 %v599_v60, %v614_v17 }
 0x587   :  { %v618_v19 = vmul.f32 %v616_v18, %v616_v18 }
 0x589   :  { %v622_v20 = vsel %vm118_vm0, %v618_v19, 0.0 }
 0x58a   :  { %623 = vadd.xlane.f32.xlu2 %v622_v20 }
 0x5f5   :  { %v621_v21 = vpop.xlane.xlu1 %620 }
 0x5f6   :  { %v625_v22 = vmul.f32 %v621_v21, %v612_v6 }
 0x5f8   :  { %v627_v23 = vadd.f32 1e-05, %v625_v22 }
 0x5fa   :  { %801 = vrsqrt.f32 %v627_v23  ;;  %vm635_vm11 = vweird.f32 %v627_v23 }
 0x5fd   :  { %v624_v33 = vpop.xlane.xlu2 %623 }
 0x5fe   :  { %v626_v24 = vmul.f32 %v624_v33, %v612_v6 }
 0x600   :  { %v802_v9 = vpop.eup %801  ;;  %v628_v10 = vadd.f32 1e-05, %v626_v24 }
 0x601   :  { %v630_v25 = vmul.f32 %v802_v9, %v627_v23  ;;  %vm636_vm10 = vweird.f32 %v802_v9 }
 0x602   :  { %803 = vrsqrt.f32 %v628_v10  ;;  %vm637_vm12 = vmor %vm635_vm11, %vm636_vm10  ;;  %vm645_vm14 = vweird.f32 %v628_v10 }
 0x603   :  { %v631_v1 = vmul.f32 %v802_v9, %v630_v25 }
 0x605   :  { %v632_v26 = vmul.f32 0.5, %v631_v1 }
 0x607   :  { %v633_v27 = vsub.f32 1.5, %v632_v26 }
 0x608   :  { %v804_v28 = vpop.eup %803 }
 0x609   :  { %v634_v29 = vmul.f32 %v802_v9, %v633_v27  ;;  %v640_v11 = vmul.f32 %v804_v28, %v628_v10  ;;  %vm646_vm13 = vweird.f32 %v804_v28 }
 0x60a   :  { %vm647_vm15 = vmor %vm645_vm14, %vm646_vm13 }
 0x60b   :  { %v638_v14 = vsel %vm637_vm12, %v802_v9, %v634_v29  ;;  %v641_v31 = vmul.f32 %v804_v28, %v640_v11 }
 0x60c   :  { %v649_v32 = vmul.f32 %v638_v14, %v615_v8 }
 0x60d   :  { %v642_v39 = vmul.f32 0.5, %v641_v31 }
 0x60e   :  { %v654_v34 = vmul.f32 %v765_v41, %v649_v32 }
 0x60f   :  { %v643_v35 = vsub.f32 1.5, %v642_v39 }
 0x610   :  { %v659_v43 = vadd.f32 %v766_v12, %v654_v34 }
 0x611   :  { %v644_v36 = vmul.f32 %v804_v28, %v643_v35 }
 0x612   :  { %661 = vst.msk [vmem:[#allocation10] sm:$0xff] %vm118_vm0, %v659_v43 }
 0x613   :  { %v648_v38 = vsel %vm647_vm15, %v804_v28, %v644_v36 }
 0x614   :  { %v650_v15 = vmul.f32 %v648_v38, %v616_v18 }
 0x616   :  { %v655_v40 = vmul.f32 %v765_v41, %v650_v15 }
 0x618   :  { %v660_v37 = vadd.f32 %v766_v12, %v655_v40 }
 0x61a   :  { %662 = vst.msk [vmem:[#allocation10 + $0x8] sm:$0xff] %vm118_vm0, %v660_v37 }
 0x61b   :  { %675 = dma.vmem_to_hbm [thread:$0]  %s668_s16, 256, %s670_s1, [#allocation4], %s934_s13, %s934_s13, %s935_s14  }
 0x61c   :  { %931 = dma.done.wait [#allocation4], 256  }
 0x61d   :  { %932 = vsyncadd [#allocation4], 4294967040 }
 0x61e   :  { %680 = vsyncpa [#allocation3], 1 }
 0x61f   :  { %681 = vsyncpa [#allocation6], 1 }
 0x620   :  { %682 = vsyncpa [#allocation9], 1 }
 0x621   :  { %683 = vsyncpa [#allocation4], 1 }

</bundles_post_ra>
